<compile_context>
chip_gen: v5e
topology: v5e:2x2
jax: 0.10.0
libtpu: 0.0.40
codegen_flags: <defaults>
</compile_context>

<pallas_src>
import functools

import jax
import jax.numpy as jnp
from jax.experimental import pallas as pl
from jax.experimental.pallas import tpu as pltpu


def _attention_kernel(z_ref, w_ref, out_ref, beta_ref):
    z = z_ref[...].astype(jnp.float32)          # (tb, N, D)
    w = w_ref[...].astype(jnp.float32)          # (1, D) lane-dense row vector

    # Projection on the VPU (broadcast multiply) + XLU lane reduce.
    # (tb, N, D) * (1, D) -> (tb, N, D); reduce over D (lane axis) -> (tb, N).
    logits = jnp.sum(z * w, axis=-1)            # (tb, N), no size-1 trailing dim

    # Numerically-stable softmax over the token axis (last axis here),
    # matching torch.softmax(w, dim=1).
    m = jnp.max(logits, axis=-1, keepdims=True)          # (tb, 1)
    e = jnp.exp(logits - m)                               # (tb, N)  (EUP)
    denom = jnp.sum(e, axis=-1, keepdims=True)            # (tb, 1)
    inv_denom = pl.reciprocal(denom, approx=False)        # (tb, 1)  (EUP, exact)
    beta = e * inv_denom                                   # (tb, N)

    # Weighted sum over tokens: (beta * z).sum(dim=1) -> (tb, D).
    # N=8 -> VPU multiply + sublane reduce; no MXU.
    out = jnp.sum(beta[:, :, None] * z, axis=1)            # (tb, D)

    out_ref[...] = out.astype(out_ref.dtype)
    beta_ref[...] = beta.astype(beta_ref.dtype)


@functools.partial(jax.jit, static_argnames=("block_b",))
def attention_forward(z, w_proj, *, block_b=None):
    """Forward pass of the Attention module.

    z:      (B, N, D) float32 or bfloat16.
    w_proj: (1, D)    nn.Linear(in_size, 1, bias=False).weight, as-is.
    block_b: optional batch tile.  None -> whole batch in one grid step
             (right choice at small B).  When B is large, pass a tile that
             divides B (multiple of 8 for dense sublane stores); the grid
             axis is marked "parallel" so v7x shards it across both TCs.

    Returns (out, beta) with out: (B, D), beta: (B, N, 1) — same as torch.
    """
    B, N, D = z.shape
    assert w_proj.shape == (1, D)

    if block_b is None or block_b >= B:
        block_b = B
    assert B % block_b == 0, "block_b must divide B"
    grid = (B // block_b,)

    # Advisory cost hint: this call is bandwidth/overhead bound and tiny.
    elem_bytes = jnp.dtype(z.dtype).itemsize
    bytes_io = elem_bytes * (z.size + B * D + B * N) + 4 * w_proj.size
    cost = pl.CostEstimate(
        flops=4 * B * N * D,          # proj mul+add, weighted-sum mul+add
        transcendentals=B * N,        # exp
        bytes_accessed=bytes_io,
    )

    out, beta2d = pl.pallas_call(
        _attention_kernel,
        out_shape=(
            jax.ShapeDtypeStruct((B, D), z.dtype),    # pooled output
            jax.ShapeDtypeStruct((B, N), z.dtype),    # lane-dense beta
        ),
        grid=grid,
        in_specs=[
            pl.BlockSpec((block_b, N, D), lambda i: (i, 0, 0)),
            pl.BlockSpec((1, D), lambda i: (0, 0)),
        ],
        out_specs=(
            pl.BlockSpec((block_b, D), lambda i: (i, 0)),
            pl.BlockSpec((block_b, N), lambda i: (i, 0)),
        ),
        compiler_params=pltpu.CompilerParams(
            dimension_semantics=("parallel",),
        ),
        cost_estimate=cost,
    )(z, w_proj)

    # Restore the PyTorch-facing (B, N, 1) shape outside the kernel (free
    # layout plumbing; keeps the in-kernel writeback lane-dense).
    return out, beta2d[:, :, None]


def _reference(z, w_proj):
    logits = jnp.einsum("bnd,od->bno", z.astype(jnp.float32),
                        w_proj.astype(jnp.float32))        # (B, N, 1)
    beta = jax.nn.softmax(logits, axis=1)
    return jnp.sum(beta * z.astype(jnp.float32), axis=1), beta


if __name__ == "__main__":
    key = jax.random.PRNGKey(0)
    k_z, k_w = jax.random.split(key)

    B, N, D = 2, 8, 32   # batch, tokens, in_size

    z = jax.random.normal(k_z, (B, N, D), dtype=jnp.float32)

    # Deterministic init mimicking nn.Linear(in_size, 1, bias=False):
    # PyTorch weight shape is (1, D); kept as a lane-dense row.
    bound = 1.0 / (D ** 0.5)
    w_proj = jax.random.uniform(k_w, (1, D), dtype=jnp.float32,
                                minval=-bound, maxval=bound)

    out, beta = attention_forward(z, w_proj)
    out, beta = jax.block_until_ready((out, beta))

    out_ref, beta_ref = _reference(z, w_proj)
    assert out.shape == (B, D) and beta.shape == (B, N, 1)
    assert jnp.allclose(out, out_ref, atol=1e-5, rtol=1e-5)
    assert jnp.allclose(beta, beta_ref, atol=1e-5, rtol=1e-5)
    # beta is a valid distribution over tokens
    assert jnp.allclose(jnp.sum(beta, axis=1), 1.0, atol=1e-5)

    print("KERNEL_OK")
</pallas_src>

<mosaic_0001>
module attributes {stable_mosaic.version = 11 : i64} {
  func.func @_attention_kernel(%arg0: i32, %arg1: memref<2x8x32xf32, #tpu.memory_space<vmem>>, %arg2: memref<1x32xf32, #tpu.memory_space<vmem>>, %arg3: memref<2x32xf32, #tpu.memory_space<vmem>>, %arg4: memref<2x8xf32, #tpu.memory_space<vmem>>) attributes {dimension_semantics = [#tpu.dimension_semantics<parallel>], iteration_bounds = array<i64: 1>, scalar_prefetch = 0 : i64, scratch_operands = 0 : i64, tpu.core_type = #tpu.core_type<tc>, window_params = [{transform_indices = @transform_0, window_bounds = array<i64: 2, 8, 32>}, {pipeline_mode = #tpu.pipeline_mode<synchronous>, transform_indices = @transform_1, window_bounds = array<i64: 1, 32>}, {transform_indices = @transform_2, window_bounds = array<i64: 2, 32>}, {transform_indices = @transform_3, window_bounds = array<i64: 2, 8>}]} {
    %c0 = arith.constant 0 : index
    %c0_0 = arith.constant 0 : index
    %c0_1 = arith.constant 0 : index
    %0 = vector.load %arg1[%c0, %c0_0, %c0_1] : memref<2x8x32xf32, #tpu.memory_space<vmem>>, vector<2x8x32xf32>
    %c0_2 = arith.constant 0 : index
    %c0_3 = arith.constant 0 : index
    %1 = vector.load %arg2[%c0_2, %c0_3] : memref<1x32xf32, #tpu.memory_space<vmem>>, vector<1x32xf32>
    %2 = vector.shape_cast %1 : vector<1x32xf32> to vector<1x1x32xf32>
    %3 = vector.broadcast %2 : vector<1x1x32xf32> to vector<2x8x32xf32>
    %4 = arith.mulf %0, %3 : vector<2x8x32xf32>
    %cst = arith.constant dense<0.000000e+00> : vector<2x8xf32>
    %5 = vector.multi_reduction <add>, %4, %cst [2] : vector<2x8x32xf32> to vector<2x8xf32>
    %cst_4 = arith.constant dense<0xFF800000> : vector<2xf32>
    %6 = vector.multi_reduction <maximumf>, %5, %cst_4 [1] : vector<2x8xf32> to vector<2xf32>
    %7 = vector.shape_cast %6 : vector<2xf32> to vector<2x1xf32>
    %8 = vector.broadcast %7 : vector<2x1xf32> to vector<2x8xf32>
    %9 = arith.subf %5, %8 : vector<2x8xf32>
    %10 = math.exp %9 : vector<2x8xf32>
    %cst_5 = arith.constant dense<0.000000e+00> : vector<2xf32>
    %11 = vector.multi_reduction <add>, %10, %cst_5 [1] : vector<2x8xf32> to vector<2xf32>
    %12 = vector.shape_cast %11 : vector<2xf32> to vector<2x1xf32>
    %13 = tpu.reciprocal %12 : vector<2x1xf32> -> vector<2x1xf32>
    %14 = vector.broadcast %13 : vector<2x1xf32> to vector<2x8xf32>
    %15 = arith.mulf %10, %14 : vector<2x8xf32>
    %16 = vector.shape_cast %15 : vector<2x8xf32> to vector<2x8x1xf32>
    %17 = vector.broadcast %16 : vector<2x8x1xf32> to vector<2x8x32xf32>
    %18 = arith.mulf %17, %0 : vector<2x8x32xf32>
    %cst_6 = arith.constant dense<0.000000e+00> : vector<2x32xf32>
    %19 = vector.multi_reduction <add>, %18, %cst_6 [1] : vector<2x8x32xf32> to vector<2x32xf32>
    %c0_7 = arith.constant 0 : index
    %c0_8 = arith.constant 0 : index
    %20 = vector.load %arg3[%c0_7, %c0_8] : memref<2x32xf32, #tpu.memory_space<vmem>>, vector<2x32xf32>
    tpu.vector_store %arg3[%c0_7, %c0_8], %19 {strides = array<i32>} : memref<2x32xf32, #tpu.memory_space<vmem>>, vector<2x32xf32>,
    %c0_9 = arith.constant 0 : index
    %c0_10 = arith.constant 0 : index
    %21 = vector.load %arg4[%c0_9, %c0_10] : memref<2x8xf32, #tpu.memory_space<vmem>>, vector<2x8xf32>
    tpu.vector_store %arg4[%c0_9, %c0_10], %15 {strides = array<i32>} : memref<2x8xf32, #tpu.memory_space<vmem>>, vector<2x8xf32>,
    return
  }
  func.func @transform_0(%arg0: i32) -> (i32, i32, i32) {
    %c0_i32 = arith.constant 0 : i32
    %c0_i32_0 = arith.constant 0 : i32
    %c0_i32_1 = arith.constant 0 : i32
    return %arg0, %c0_i32, %c0_i32_0 : i32, i32, i32
  }
  func.func @transform_1(%arg0: i32) -> (i32, i32) {
    %c0_i32 = arith.constant 0 : i32
    %c0_i32_0 = arith.constant 0 : i32
    %c0_i32_1 = arith.constant 0 : i32
    return %c0_i32, %c0_i32_0 : i32, i32
  }
  func.func @transform_2(%arg0: i32) -> (i32, i32) {
    %c0_i32 = arith.constant 0 : i32
    %c0_i32_0 = arith.constant 0 : i32
    return %arg0, %c0_i32 : i32, i32
  }
  func.func @transform_3(%arg0: i32) -> (i32, i32) {
    %c0_i32 = arith.constant 0 : i32
    %c0_i32_0 = arith.constant 0 : i32
    return %arg0, %c0_i32 : i32, i32
  }
}

</mosaic_0001>

<bundles_post_ra>
// kernel: attention_forward.1
= control target key start
LH: loop header
LB: loop body
LE: loop exit
PB: predicated region body
PF: predicated region fallthrough
CT: control target
= control target key end

     0   :  { %9 = vsyncpa [#allocation3], 0  ;;  %s378_s0 = inlined_call_operand.hbm [shape: f32[2,8,32], index: 0, kind: input, shape index: {}]   ;;  %s379_s1 = inlined_call_operand.hbm [shape: f32[1,32], index: 1, kind: input, shape index: {}]   ;;  %s380_s2 = inlined_call_operand.hbm [shape: f32[2,32], index: 2, kind: output, shape index: {0}]   ;;  %s381_s3 = inlined_call_operand.hbm [shape: f32[2,8], index: 3, kind: output, shape index: {1}]  }
   0x1   :  { %10 = vsyncpa [#allocation6], 0 }
   0x2   :  { %11 = vsyncpa [#allocation4], 0 }
   0x3   :  { %12 = vsyncpa [#allocation9], 0  ;;  %s17_s14 = sshll.u32 %s378_s0, 4  ;;  %s312_s15 = smov [#allocation2]   ;;  %s18_s14 = int_to_ptr.hbm [resolvable:$true] %s17_s14 }
   0x4   :  { %s19_s16 = sshll.u32 %s312_s15, 4  ;;  %s31_s19 = sshll.u32 %s379_s1, 4  ;;  %s20_s16 = int_to_ptr.vmem [resolvable:$true] %s19_s16  ;;  %s32_s19 = int_to_ptr.hbm [resolvable:$true] %s31_s19 }
   0x5   :  { %s313_s20 = smov 128   ;;  %s314_s21 = smov 8  }
   0x6   :  { %25 = dma.hbm_to_vmem [thread:$0]  %s18_s14, 256, %s20_s16, [#allocation3], %s313_s20, %s313_s20, %s314_s21  }
   0x7   :  { %s315_s22 = smov [#allocation5]  }
   0x8   :  { %s33_s23 = sshll.u32 %s315_s22, 4  ;;  %s34_s23 = int_to_ptr.vmem [resolvable:$true] %s33_s23 }
   0x9   :  { %36 = dma.hbm_to_vmem [thread:$0]  %s32_s19, 16, %s34_s23, [#allocation6]  }
   0xa   :  { %304 = dma.done.wait [#allocation3], 256  }
   0xb   :  { %305 = vsyncadd [#allocation3], 4294967040 }
   0xc   :  { %306 = dma.done.wait [#allocation6], 16  }
   0xd   :  { %307 = vsyncadd [#allocation6], 4294967280  ;;  %v345_v0 = vld [vmem:[#allocation2] sm:$0xff]  ;;  %v201_v1 = vld [vmem:[#allocation5] ss:$0 sm:$0xff]  ;;  %vm53_vm0 = vcmask 261120   ;;  %v62_v8 = vlaneseq }
   0xe   :  { %v51_v2 = vmul.f32 %v201_v1, %v345_v0  ;;  %v348_v3 = vld [vmem:[#allocation2 + $0x8] sm:$0xff]  ;;  %vm66_vm1 = vcmask 1041409   ;;  %vm69_vm2 = vcmask 58368   ;;  %v316_v15 = vmov 0   ;;  %s317_s0 = smov [#allocation8]   ;;  %s175_s26 = sshll.u32 %s381_s3, 4  ;;  %s176_s26 = int_to_ptr.hbm [resolvable:$true] %s175_s26 }
   0xf   :  { %v52_v5 = vmul.f32 %v201_v1, %v348_v3  ;;  %v353_v9 = vand.u32 127, %v62_v8  ;;  %199 = vset.pattern.permute.xlu2 %v316_v15  ;;  %198 = vset.pattern.permute.xlu1 %v316_v15  ;;  %s173_s1 = sshll.u32 %s317_s0, 4  ;;  %s318_s3 = smov [#allocation7]   ;;  %vm150_vm7 = vcmask 254976   ;;  %s174_s1 = int_to_ptr.vmem [resolvable:$true] %s173_s1 }
  0x10   :  { %v54_v4 = vsel %vm53_vm0, %v51_v2, 0.0  ;;  %200 = vset.pattern.permute.xlu0 %v316_v15  ;;  %s162_s27 = sshll.u32 %s318_s3, 4  ;;  %s164_s30 = sshll.u32 %s380_s2, 4  ;;  %s163_s27 = int_to_ptr.vmem [resolvable:$true] %s162_s27  ;;  %s165_s30 = int_to_ptr.hbm [resolvable:$true] %s164_s30 }
  0x11   :  { %55 = vadd.xlane.f32.xlu0 %v54_v4  ;;  %v57_v6 = vsel %vm53_vm0, %v52_v5, 0.0 }
  0x19   :  { %58 = vadd.xlane.f32.xlu0 %v57_v6 }
  0x84   :  { %v56_v7 = vpop.xlane.xlu0 %55 }
  0x85   :  { %v64_v11 = vperm.slane %v56_v7, %v353_v9 }
  0x8c   :  { %v59_v10 = vpop.xlane.xlu0 %58 }
  0x8d   :  { %v65_v12 = vperm.slane %v59_v10, %v353_v9 }
  0x8f   :  { %v67_v13 = vsel %vm66_vm1, %v65_v12, %v64_v11 }
  0x90   :  { %v70_v14 = vsel %vm69_vm2, %v67_v13, -inf }
  0x91   :  { %71 = vmax.xlane.f32.xlu1 %v70_v14 }
 0x104   :  { %v72_v16 = vpop.xlane.xlu1 %71 }
 0x105   :  { %v74_v17 = vperm.slane %v72_v16, 0  ;;  %v75_v18 = vperm.slane %v72_v16, 1 }
 0x107   :  { %v78_v19 = vsub.f32 %v56_v7, %v74_v17  ;;  %v79_v20 = vsub.f32 %v59_v10, %v75_v18 }
 0x109   :  { %v80_v21 = vmul.f32 1.442695, %v78_v19  ;;  %v82_v22 = vmul.f32 1.442695, %v79_v20 }
 0x10b   :  { %202 = vpow2.f32 %v80_v21 }
 0x10c   :  { %204 = vpow2.f32 %v82_v22 }
 0x111   :  { %v203_v23 = vpop.eup %202 }
 0x112   :  { %v205_v24 = vpop.eup %204  ;;  %87 = vperm.xlu1 %198, %v203_v23  }
 0x113   :  { %90 = vperm.xlu2 %199, %v205_v24  }
 0x16d   :  { %v91_v25 = vpop.permute.xlu2 %90 }
 0x16e   :  { %v93_v27 = vperm.slane %v91_v25, %v353_v9 }
 0x184   :  { %v88_v26 = vpop.permute.xlu1 %87 }
 0x185   :  { %v92_v28 = vperm.slane %v88_v26, %v353_v9 }
 0x187   :  { %v94_v29 = vsel %vm66_vm1, %v93_v27, %v92_v28 }
 0x188   :  { %v96_v30 = vsel %vm69_vm2, %v94_v29, 0.0 }
 0x189   :  { %97 = vadd.xlane.f32.xlu2 %v96_v30 }
 0x1fc   :  { %v98_v31 = vpop.xlane.xlu2 %97 }
 0x1fd   :  { %206 = vrcp.f32 %v98_v31  ;;  %v110_v35 = vand.u32 2147483648, %v98_v31  ;;  %v108_v37 = vand.u32 2147483647, %v98_v31  ;;  %vm104_vm4 = vweird.f32 %v98_v31 }
 0x1ff   :  { %v111_v39 = vor.u32 1.1754944e-38, %v110_v35  ;;  %vm109_vm6 = vcmp.eq.f32.partialorder %v108_v37, 8.507059e+37 }
 0x203   :  { %v207_v32 = vpop.eup %206 }
 0x204   :  { %v100_v33 = vmul.f32 %v207_v32, %v98_v31  ;;  %vm105_vm3 = vweird.f32 %v207_v32 }
 0x205   :  { %vm106_vm5 = vmor %vm104_vm4, %vm105_vm3 }
 0x206   :  { %v101_v34 = vsub.f32 1.0, %v100_v33 }
 0x208   :  { %v102_v36 = vmul.f32 %v207_v32, %v101_v34 }
 0x20a   :  { %v103_v38 = vadd.f32 %v207_v32, %v102_v36 }
 0x20c   :  { %v107_v40 = vsel %vm106_vm5, %v207_v32, %v103_v38 }
 0x20d   :  { %v112_v41 = vsel %vm109_vm6, %v111_v39, %v107_v40 }
 0x20e   :  { %v115_v42 = vperm.slane %v112_v41, 1  ;;  %v114_v43 = vperm.slane %v112_v41, 0 }
 0x210   :  { %v119_v44 = vmul.f32 %v205_v24, %v115_v42  ;;  %v118_v45 = vmul.f32 %v203_v23, %v114_v43 }
 0x212   :  { %127 = vperm.xlu1 %198, %v119_v44   ;;  %122 = vperm.xlu0 %200, %v118_v45  }
 0x284   :  { %v128_v46 = vpop.permute.xlu1 %127  ;;  %v123_v47 = vpop.permute.xlu0 %122 }
 0x285   :  { %v131_v48 = vmul.f32 %v128_v46, %v348_v3  ;;  %v153_v49 = vperm.slane %v128_v46, %v353_v9  ;;  %v130_v50 = vmul.f32 %v123_v47, %v345_v0  ;;  %v152_v51 = vperm.slane %v123_v47, %v353_v9 }
 0x287   :  { %v139_v52 = vsel %vm53_vm0, %v131_v48, 0.0  ;;  %v132_v53 = vsel %vm53_vm0, %v130_v50, 0.0  ;;  %v154_v54 = vsel %vm66_vm1, %v153_v49, %v152_v51 }
 0x288   :  { %v140_v55 = vrot.slane %v139_v52, 4  ;;  %v133_v56 = vrot.slane %v132_v53, 4  ;;  %156 = vst.msk [vmem:[#allocation8] sm:$0x3] %vm69_vm2, %v154_v54 }
 0x289   :  { %178 = dma.vmem_to_hbm [thread:$0]  %s174_s1, 32, %s176_s26, [#allocation9]  }
 0x28a   :  { %v141_v57 = vadd.f32 %v140_v55, %v139_v52  ;;  %v134_v58 = vadd.f32 %v133_v56, %v132_v53 }
 0x28c   :  { %v142_v59 = vrot.slane %v141_v57, 2  ;;  %v135_v60 = vrot.slane %v134_v58, 2 }
 0x28e   :  { %v143_v61 = vadd.f32 %v142_v59, %v141_v57  ;;  %v136_v62 = vadd.f32 %v135_v60, %v134_v58 }
 0x290   :  { %v144_v63 = vrot.slane %v143_v61, 1  ;;  %v137_v0 = vrot.slane %v136_v62, 1 }
 0x292   :  { %v145_v1 = vadd.f32 %v144_v63, %v143_v61  ;;  %v138_v2 = vadd.f32 %v137_v0, %v136_v62 }
 0x294   :  { %v148_v3 = vsel %vm66_vm1, %v145_v1, %v138_v2 }
 0x295   :  { %151 = vst.msk [vmem:[#allocation7] sm:$0x3] %vm150_vm7, %v148_v3 }
 0x296   :  { %167 = dma.vmem_to_hbm [thread:$0]  %s163_s27, 32, %s165_s30, [#allocation4]  }
 0x297   :  { %308 = dma.done.wait [#allocation4], 32  }
 0x298   :  { %309 = vsyncadd [#allocation4], 4294967264 }
 0x299   :  { %310 = dma.done.wait [#allocation9], 32  }
 0x29a   :  { %311 = vsyncadd [#allocation9], 4294967264 }
 0x29b   :  { %187 = vsyncpa [#allocation3], 1 }
 0x29c   :  { %188 = vsyncpa [#allocation6], 1 }
 0x29d   :  { %189 = vsyncpa [#allocation4], 1 }
 0x29e   :  { %190 = vsyncpa [#allocation9], 1 }

</bundles_post_ra>
